<compile_context>
chip_gen: v7x
topology: tpu7x:2x2x1
jax: 0.10.0
libtpu: 0.0.40
codegen_flags: <defaults>
</compile_context>

<pallas_src>
import math

import jax
import jax.numpy as jnp
from jax.experimental import pallas as pl
from jax.experimental.pallas import tpu as pltpu


_ROW_ALIGN = 8  # f32 sublane count


def _round_up(x: int, m: int) -> int:
    return ((x + m - 1) // m) * m


def _sinusoidal_kernel(t_ref, freq_ref, out_ref):
    # t_ref:    (tb, 1)     timesteps (int or float)
    # freq_ref: (1, half)   exp(-arange(half) * log(10000)/(half-1))
    # out_ref:  (tb, 2*half) -> [sin(t*f) | cos(t*f)]
    half = freq_ref.shape[-1]
    t = t_ref[...].astype(jnp.float32)          # (tb, 1)
    args = t * freq_ref[...]                    # (tb, half), lane/sublane broadcast
    # Direct sin/cos (no phase trick) so arguments match the reference exactly.
    out_ref[:, :half] = jnp.sin(args)
    out_ref[:, half:] = jnp.cos(args)


def _row_tile(batch: int, dim: int, block_rows: int) -> int:
    """Pick the row tile: big (overhead-amortizing), VMEM-safe, 8-aligned."""
    if batch <= _ROW_ALIGN:
        # Single block equal to the full row extent (valid per the (8,128) rule).
        return batch
    full = _round_up(batch, _ROW_ALIGN)
    # VMEM guard (review, v7x): double-buffered output tile = 2*tb*dim*4 bytes;
    # keep it under ~24 MiB so it fits v7x's scoped VMEM with headroom.
    vmem_cap_rows = (24 << 20) // (2 * dim * 4)
    vmem_cap_rows = max(_ROW_ALIGN, (vmem_cap_rows // _ROW_ALIGN) * _ROW_ALIGN)
    tb = min(block_rows, vmem_cap_rows, full)
    # v7x megacore: if everything lands in one grid step but the HBM writeback
    # is big enough (>= ~2 MiB) that it dominates the ~0.35 us per-step
    # overhead, split into two steps so "parallel" can shard across both TCs.
    if tb >= full and batch * dim * 4 >= (2 << 20):
        tb = max(_ROW_ALIGN, _round_up((full + 1) // 2, _ROW_ALIGN))
    return tb


def sinusoidal_position_embeddings(time: jax.Array, dim: int,
                                    *, block_rows: int = 4096) -> jax.Array:
    """time: [batch] (int or float timesteps) -> [batch, dim] float32 embeddings."""
    assert dim % 2 == 0, "dim must be even (sin/cos halves)"
    half = dim // 2
    assert half > 1, "dim must be >= 4 (log(10000)/(half_dim-1) would divide by zero)"

    batch = time.shape[0]

    # Frequency table built once in the wrapper (hoisted out of the kernel);
    # same constant as torch: log(10000) / (half_dim - 1).
    scale = math.log(10000.0) / (half - 1)
    freqs = jnp.exp(jnp.arange(half, dtype=jnp.float32) * -scale).reshape(1, half)

    tb = _row_tile(batch, dim, block_rows)
    grid = (pl.cdiv(batch, tb),)   # no padding / no trailing slice: last block masked

    t2d = time.reshape(batch, 1)

    cost = pl.CostEstimate(
        flops=batch * half,               # one multiply per sin/cos argument
        transcendentals=batch * dim,      # sin on half + cos on half
        bytes_accessed=batch * dim * 4 + batch * t2d.dtype.itemsize + half * 4,
    )

    return pl.pallas_call(
        _sinusoidal_kernel,
        out_shape=jax.ShapeDtypeStruct((batch, dim), jnp.float32),
        grid=grid,
        in_specs=[
            pl.BlockSpec((tb, 1), lambda i: (i, 0)),       # timesteps, row-tiled
            pl.BlockSpec((1, half), lambda i: (0, 0)),     # freq table, resident
        ],
        out_specs=pl.BlockSpec((tb, dim), lambda i: (i, 0)),
        compiler_params=pltpu.CompilerParams(
            # rows are embarrassingly parallel: shardable across both
            # TensorCores on v7x, harmless on v5e/v6e.
            dimension_semantics=("parallel",)),
        cost_estimate=cost,
    )(t2d, freqs)


def _reference(time: jax.Array, dim: int) -> jax.Array:
    """Pure-JAX reference mirroring the PyTorch forward exactly."""
    half = dim // 2
    scale = math.log(10000.0) / (half - 1)
    freqs = jnp.exp(jnp.arange(half, dtype=jnp.float32) * -scale)
    args = time.astype(jnp.float32)[:, None] * freqs[None, :]
    return jnp.concatenate([jnp.sin(args), jnp.cos(args)], axis=-1)


if __name__ == "__main__":
    batch, dim = 8, 64

    key = jax.random.PRNGKey(0)
    # integer diffusion timesteps, like typical torch usage
    timesteps = jax.random.randint(key, (batch,), minval=0, maxval=1000,
                                   dtype=jnp.int32)

    out = jax.block_until_ready(sinusoidal_position_embeddings(timesteps, dim))
    ref = _reference(timesteps, dim)

    assert out.shape == (batch, dim), out.shape
    assert out.dtype == jnp.float32, out.dtype
    # Both paths now feed identical arguments to sin/cos; the tolerance only
    # covers transcendental-implementation differences (Mosaic vs XLA) at
    # arguments up to ~1e3 (range-reduction rounding, a few ulps of the arg).
    assert jnp.allclose(out, ref, atol=2e-3, rtol=2e-3), "mismatch vs reference"

    print("KERNEL_OK")
</pallas_src>

<mosaic_0001>
module attributes {stable_mosaic.version = 11 : i64} {
  func.func @_sinusoidal_kernel(%arg0: i32, %arg1: memref<8x1xi32, #tpu.memory_space<vmem>>, %arg2: memref<1x32xf32, #tpu.memory_space<vmem>>, %arg3: memref<8x64xf32, #tpu.memory_space<vmem>>) attributes {dimension_semantics = [#tpu.dimension_semantics<parallel>], iteration_bounds = array<i64: 1>, scalar_prefetch = 0 : i64, scratch_operands = 0 : i64, tpu.core_type = #tpu.core_type<tc>, window_params = [{transform_indices = @transform_0, window_bounds = array<i64: 8, 1>}, {pipeline_mode = #tpu.pipeline_mode<synchronous>, transform_indices = @transform_1, window_bounds = array<i64: 1, 32>}, {transform_indices = @transform_2, window_bounds = array<i64: 8, 64>}]} {
    %c0 = arith.constant 0 : index
    %c0_0 = arith.constant 0 : index
    %0 = vector.load %arg1[%c0, %c0_0] : memref<8x1xi32, #tpu.memory_space<vmem>>, vector<8x1xi32>
    %1 = arith.sitofp %0 : vector<8x1xi32> to vector<8x1xf32>
    %c0_1 = arith.constant 0 : index
    %c0_2 = arith.constant 0 : index
    %2 = vector.load %arg2[%c0_1, %c0_2] : memref<1x32xf32, #tpu.memory_space<vmem>>, vector<1x32xf32>
    %3 = vector.broadcast %1 : vector<8x1xf32> to vector<8x32xf32>
    %4 = vector.broadcast %2 : vector<1x32xf32> to vector<8x32xf32>
    %5 = arith.mulf %3, %4 : vector<8x32xf32>
    %6 = math.sin %5 : vector<8x32xf32>
    %c0_3 = arith.constant 0 : index
    %c0_4 = arith.constant 0 : index
    %7 = vector.load %arg3[%c0_3, %c0_4] : memref<8x64xf32, #tpu.memory_space<vmem>>, vector<8x32xf32>
    tpu.vector_store %arg3[%c0_3, %c0_4], %6 {strides = array<i32>} : memref<8x64xf32, #tpu.memory_space<vmem>>, vector<8x32xf32>,
    %8 = math.cos %5 : vector<8x32xf32>
    %c0_5 = arith.constant 0 : index
    %c32 = arith.constant 32 : index
    %9 = vector.load %arg3[%c0_5, %c32] : memref<8x64xf32, #tpu.memory_space<vmem>>, vector<8x32xf32>
    tpu.vector_store %arg3[%c0_5, %c32], %8 {strides = array<i32>} : memref<8x64xf32, #tpu.memory_space<vmem>>, vector<8x32xf32>,
    return
  }
  func.func @transform_0(%arg0: i32) -> (i32, i32) {
    %c0_i32 = arith.constant 0 : i32
    %c0_i32_0 = arith.constant 0 : i32
    return %arg0, %c0_i32 : i32, i32
  }
  func.func @transform_1(%arg0: i32) -> (i32, i32) {
    %c0_i32 = arith.constant 0 : i32
    %c0_i32_0 = arith.constant 0 : i32
    %c0_i32_1 = arith.constant 0 : i32
    return %c0_i32, %c0_i32_0 : i32, i32
  }
  func.func @transform_2(%arg0: i32) -> (i32, i32) {
    %c0_i32 = arith.constant 0 : i32
    %c0_i32_0 = arith.constant 0 : i32
    return %arg0, %c0_i32 : i32, i32
  }
}

</mosaic_0001>

<bundles_post_ra>
// kernel: tpu_custom_call.1
= control target key start
LH: loop header
LB: loop body
LE: loop exit
PB: predicated region body
PF: predicated region fallthrough
CT: control target
= control target key end

     0   :  { %v307_v1 = vmov 0   ;;  %s371_s0 = inlined_call_operand.vmem [shape: s32[8,1], index: 0, kind: input, shape index: {}]   ;;  %s372_s1 = inlined_call_operand.vmem [shape: f32[1,32], index: 1, kind: input, shape index: {}]   ;;  %s373_s2 = inlined_call_operand.hbm [shape: f32[8,64], index: 2, kind: output, shape index: {}]  }
   0x1   :  { %v12_v0 = vld [vmem:[%s371_s0] sm:$0xff]  ;;  %278 = vset.pattern.permute.xlu0 %v307_v1 }
   0x2   :  { %v13_v2 = vcvt.s32.f32 %v12_v0 }
   0x3   :  { %7 = vsyncpa [#allocation3], 0  ;;  %v256_v3 = vld [vmem:[%s372_s1] ss:$0 sm:$0xff]  ;;  %v308_v16 = vmov 683565275  }
   0x4   :  { %17 = vperm.xlu0 %278, %v13_v2   ;;  %v309_v18 = vmov 2475754826   ;;  %v310_v21 = vmov 2131351028   ;;  %v311_v24 = vmov 2102212464  }
   0x5   :  { %v312_v27 = vmov 920167782   ;;  %v313_v30 = vmov 1326507024   ;;  %vm131_vm11 = vcmask 261120   ;;  %s314_s0 = smov 32  }
   0x6   :  { %s315_s1 = smov [#allocation2]  }
   0x7   :  { %s248_s13 = sshll.u32 %s315_s1, 4  ;;  %s249_s13 = int_to_ptr.vmem [resolvable:$true] %s248_s13 }
   0x8   :  { %s283_s14 = scalar_lea.vmem %s249_s13, 128  ;;  %p288_p1 = scmp.lt.s32.totalorder %s249_s13, %s249_s13 }
   0x9   :  { %p284_p0 = scmp.ne.s32.totalorder %s249_s13, %s283_s14  ;;  %p289_p2 = scmp.lt.s32.totalorder %s283_s14, %s283_s14 }
   0xb   :  { %p290_p3 = por %p289_p2, %p288_p1 }
   0xd   :  { %p291_p4 = pnand %p290_p3, %p284_p0 }
  0x83   :  { %v18_v4 = vpop.permute.xlu0 %17 }
  0x84   :  { %v337_v5 = vmul.f32 %v256_v3, %v18_v4 }
  0x86   :  { %v30_v6 = vand.u32 2139095040, %v337_v5  ;;  %v27_v10 = vand.u32 2147483647, %v337_v5  ;;  %vm29_vm7 = vcmp.lt.s32.totalorder %v337_v5, 0 }
  0x88   :  { %v31_v7 = vshrl.u32 %v30_v6, 23  ;;  %v34_v13 = vand.u32 8388607, %v27_v10  ;;  %vm28_vm8 = vcmp.le.f32.partialorder %v27_v10, 0.7853982 }
  0x8a   :  { %v257_v8 = vadd.s32 4294967169, %v31_v7  ;;  %v35_v32 = vor.u32 8388608, %v34_v13 }
  0x8c   :  { %v37_v9 = vadd.s32 1, %v257_v8  ;;  %v75_v46 = vshll.u32 %v35_v32, 8 }
  0x8e   :  { %vm38_vm0 = vcmp.gt.s32.totalorder %v37_v9, 0 }
  0x8f   :  { %v39_v11 = vsel %vm38_vm0, %v37_v9, 0  ;;  %vm119_vm0 = vweird.f32 %v337_v5 }
  0x90   :  { %v41_v12 = vand.u32 31, %v39_v11  ;;  %v40_v15 = vshrl.u32 %v39_v11, 5 }
  0x92   :  { %v42_v14 = vsub.s32 32, %v41_v12  ;;  %v44_v17 = vshll.u32 %v308_v16, %v41_v12  ;;  %v47_v19 = vshll.u32 %v309_v18, %v41_v12  ;;  %v50_v23 = vshll.u32 %v310_v21, %v41_v12 }
  0x93   :  { %v53_v26 = vshll.u32 %v311_v24, %v41_v12  ;;  %v56_v29 = vshll.u32 %v312_v27, %v41_v12  ;;  %vm59_vm1 = vcmp.lt.s32.totalorder %v40_v15, 1  ;;  %vm62_vm2 = vcmp.lt.s32.totalorder %v40_v15, 4 }
  0x94   :  { %v45_v20 = vshrl.u32 %v309_v18, %v42_v14  ;;  %v48_v22 = vshrl.u32 %v310_v21, %v42_v14  ;;  %v51_v25 = vshrl.u32 %v311_v24, %v42_v14  ;;  %v54_v28 = vshrl.u32 %v312_v27, %v42_v14 }
  0x95   :  { %v57_v31 = vshrl.u32 %v313_v30, %v42_v14  ;;  %v43_v41 = vshrl.u32 %v308_v16, %v42_v14  ;;  %vm61_vm3 = vcmp.lt.s32.totalorder %v40_v15, 3  ;;  %vm60_vm4 = vcmp.lt.s32.totalorder %v40_v15, 2 }
  0x96   :  { %v46_v33 = vor.u32 %v45_v20, %v44_v17  ;;  %v49_v34 = vor.u32 %v48_v22, %v47_v19  ;;  %v52_v35 = vor.u32 %v51_v25, %v50_v23  ;;  %v55_v36 = vor.u32 %v54_v28, %v53_v26 }
  0x97   :  { %v58_v37 = vor.u32 %v57_v31, %v56_v29 }
  0x98   :  { %v64_v38 = vsel %vm62_vm2, %v52_v35, 2102212464  ;;  %v67_v39 = vsel %vm59_vm1, %v46_v33, %v49_v34  ;;  %v71_v40 = vsel %vm59_vm1, %v49_v34, %v52_v35  ;;  %v68_v42 = vsel %vm62_vm2, %v55_v36, 920167782 }
  0x99   :  { %v72_v43 = vsel %vm62_vm2, %v58_v37, 1326507024  ;;  %v69_v44 = vsel %vm61_vm3, %v52_v35, %v68_v42  ;;  %v63_v47 = vsel %vm59_vm1, %v43_v41, %v46_v33  ;;  %v65_v48 = vsel %vm61_vm3, %v49_v34, %v64_v38 }
  0x9a   :  { %v73_v45 = vsel %vm61_vm3, %v55_v36, %v72_v43  ;;  %v70_v49 = vsel %vm60_vm4, %v67_v39, %v69_v44  ;;  %v66_v55 = vsel %vm60_vm4, %v63_v47, %v65_v48  ;;  %vm240_vm1 = vcmask 523520  }
  0x9b   :  { %v74_v50 = vsel %vm60_vm4, %v71_v40, %v73_v45  ;;  %v346_v53 = vmul.u32.u64.low %v75_v46, %v70_v49  ;;  %v347_v54 = vmul.u32.u64.high %v75_v46, %v70_v49, %v346_v53  ;;  %v82_v57 = vmul.u32 %v75_v46, %v66_v55 }
  0x9c   :  { %v343_v51 = vmul.u32.u64.low %v75_v46, %v74_v50  ;;  %v344_v52 = vmul.u32.u64.high %v75_v46, %v74_v50, %v343_v51 }
  0x9d   :  { %v85_v56 = vadd.s32 1, %v347_v54 }
  0x9e   :  { %vm84_vm5 = vc.u32 %v344_v52, %v346_v53  ;;  %v83_v6 = vadd.s32 %v346_v53, %v344_v52 }
  0x9f   :  { %v86_v58 = vsel %vm84_vm5, %v85_v56, %v347_v54 }
  0xa0   :  { %v87_v59 = vadd.s32 %v86_v58, %v82_v57 }
  0xa2   :  { %v88_v60 = vadd.s32 536870912, %v87_v59 }
  0xa4   :  { %v89_v61 = vshrl.u32 %v88_v60, 30 }
  0xa6   :  { %v90_v62 = vshll.u32 %v89_v61, 30  ;;  %v113_v19 = vsub.s32 4, %v89_v61 }
  0xa8   :  { %v91_v63 = vsub.s32 %v87_v59, %v90_v62  ;;  %v114_v22 = vsel %vm29_vm7, %v113_v19, %v89_v61 }
  0xa9   :  { %v116_v24 = vsel %vm28_vm8, 0, %v114_v22 }
  0xaa   :  { %v93_v0 = vsub.s32 0, %v91_v63  ;;  %v120_v25 = vadd.s32 3, %v116_v24  ;;  %v226_v27 = vand.u32 3, %v116_v24 }
  0xac   :  { %v258_v1 = vmin.u32 %v93_v0, %v91_v63  ;;  %v121_v26 = vand.u32 3, %v120_v25  ;;  %vm231_vm10 = vcmp.eq.s32.totalorder %v226_v27, 2  ;;  %vm228_vm13 = vcmp.eq.s32.totalorder %v226_v27, 0 }
  0xad   :  { %vm227_vm15 = vcmp.lt.s32.totalorder %v226_v27, 2 }
  0xae   :  { %v95_v2 = vclz %v258_v1  ;;  %vm126_vm9 = vcmp.eq.s32.totalorder %v121_v26, 2  ;;  %vm123_vm12 = vcmp.eq.s32.totalorder %v121_v26, 0  ;;  %vm122_vm14 = vcmp.lt.s32.totalorder %v121_v26, 2 }
  0xb0   :  { %v259_v3 = vadd.s32 4294967294, %v95_v2 }
  0xb2   :  { %vm260_vm6 = vcmp.lt.s32.totalorder %v259_v3, 0 }
  0xb3   :  { %v98_v4 = vsel %vm260_vm6, 0, %v259_v3 }
  0xb4   :  { %v99_v7 = vsub.s32 32, %v98_v4  ;;  %v103_v8 = vsub.s32 4294967266, %v98_v4  ;;  %v100_v9 = vshll.u32 %v91_v63, %v98_v4 }
  0xb6   :  { %v101_v11 = vshrl.u32 %v83_v6, %v99_v7  ;;  %v104_v12 = vadd.s32 127, %v103_v8 }
  0xb8   :  { %v102_v13 = vor.u32 %v101_v11, %v100_v9  ;;  %v105_v14 = vshll.u32 %v104_v12, 23 }
  0xba   :  { %v106_v15 = vor.u32 4788187, %v105_v14  ;;  %v109_v17 = vcvt.s32.f32 %v102_v13 }
  0xbc   :  { %v107_v16 = vand.u32 2147483647, %v106_v15 }
  0xbe   :  { %v110_v18 = vmul.f32 %v109_v17, %v107_v16 }
  0xc0   :  { %v111_v20 = vxor.u32 2147483648, %v110_v18 }
  0xc2   :  { %v112_v21 = vsel %vm29_vm7, %v111_v20, %v110_v18 }
  0xc3   :  { %v115_v23 = vsel %vm28_vm8, %v337_v5, %v112_v21 }
  0xc4   :  { %279 = vcosq.f32 %v115_v23 }
  0xc5   :  { %281 = vsinq.f32 %v115_v23 }
  0xce   :  { %v280_v28 = vpop.eup %279 }
  0xcf   :  { %v282_v29 = vpop.eup %281  ;;  %v127_v30 = vxor.u32 2147483648, %v280_v28 }
  0xd0   :  { %v124_v31 = vxor.u32 2147483648, %v282_v29 }
  0xd1   :  { %v233_v32 = vsel %vm231_vm10, %v127_v30, %v282_v29  ;;  %v128_v10 = vsel %vm126_vm9, %v127_v30, %v282_v29 }
  0xd2   :  { %v230_v33 = vsel %vm228_vm13, %v280_v28, %v124_v31  ;;  %v125_v34 = vsel %vm123_vm12, %v280_v28, %v124_v31 }
  0xd3   :  { %v234_v35 = vsel %vm227_vm15, %v230_v33, %v233_v32  ;;  %v129_v36 = vsel %vm122_vm14, %v125_v34, %v128_v10 }
  0xd4   :  { %v235_v37 = vsel %vm119_vm0, nan, %v234_v35  ;;  %v130_v38 = vsel %vm119_vm0, nan, %v129_v36 }
  0xd5   :  { %237 = vrot.lane.b32.xlu0 %v235_v37, %s314_s0  ;;  %132 = vst.msk [vmem:[#allocation2] sm:$0xff] %vm131_vm11, %v130_v38 }
 0x147   :  { %v238_v39 = vpop.permute.xlu0 %237 }
 0x148   :  { %241 = vst.msk [vmem:[#allocation2] sm:$0xff] %vm240_vm1, %v238_v39 }
 0x149   :  { %294 = shalt.err (!%p291_p4)
}
 0x14a   :  { %s295_s17 = scalar_lea.hbm %s373_s2, 128 }
 0x14b   :  { %p296_p5 = scmp.ne.s32.totalorder %s373_s2, %s295_s17  ;;  %p299_p6 = scmp.lt.u32.totalorder %s295_s17, %s373_s2 }
 0x14d   :  { %p301_p7 = pnand %p299_p6, %p296_p5 }
 0x14f   :  { %304 = shalt.err (!%p301_p7)
}
 0x150   :  { %251 = dma.vmem_to_hbm [thread:$0]  %s249_s13, 128, %s373_s2, [#allocation3]  }
 0x151   :  { %305 = dma.done.wait [#allocation3], 128  }
 0x152   :  { %306 = vsyncadd [#allocation3], 4294967168 }
 0x153   :  { %255 = vsyncpa [#allocation3], 1 }

</bundles_post_ra>
